<compile_context>
chip_gen: v6e
topology: v6e:2x2x1
jax: 0.10.0
libtpu: 0.0.40
codegen_flags: <defaults>
</compile_context>

<pallas_src>
import jax
import jax.numpy as jnp
from jax.experimental import pallas as pl
from jax.experimental.pallas import tpu as pltpu

NUM_PARAMS = 1
_LANES = 128
_SUBLANES = 8


def _round_up(x: int, m: int) -> int:
    return ((x + m - 1) // m) * m


def params_equation_kernel(params_ref, f0_ref, f1_ref, out_ref):
    # params_ref: (1, 1)          SMEM  — the single learned parameter
    # f0_ref:     (tile_r, 128)   VMEM  — features[:, 0], batch packed dense
    # f1_ref:     (tile_r, 128)   VMEM  — features[:, 1], batch packed dense
    # out_ref:    (tile_r, 128)   VMEM  — residual, sublane+lane dense
    p = params_ref[0, 0]
    out_ref[...] = f1_ref[...] * p + f0_ref[...]


def params_equation_forward(features, params, tile_rows=4096):
    """Pallas TPU forward pass for params_equation.

    features: (N, F) float32, F >= 2 (only columns 0 and 1 are used)
    params:   (1, 1) float32
    returns:  (N, 1) float32  (matches the PyTorch module's output shape)
    """
    N, F = features.shape
    if F < 2:
        raise ValueError(f"features must have at least 2 columns, got F={F}")
    if params.shape != (NUM_PARAMS, 1):
        # The reference matmul is only shape-valid for a (1, 1) params tensor.
        raise ValueError(f"params must have shape (1, 1), got {params.shape}")

    # --- Wrapper-side layout: two dense (rows, 128) slabs of the used columns.
    n_pad = _round_up(max(N, 1), _SUBLANES * _LANES)   # multiple of 1024
    rows = n_pad // _LANES                             # multiple of 8
    pad = n_pad - N

    f0 = features[:, 0]
    f1 = features[:, 1]
    if pad:
        f0 = jnp.pad(f0, (0, pad))
        f1 = jnp.pad(f1, (0, pad))
    f0 = f0.reshape(rows, _LANES)
    f1 = f1.reshape(rows, _LANES)

    # --- Tile selection: dense (tile_r, 128) blocks, tile_r a multiple of 8.
    tile_r = min(int(tile_rows), rows)
    if rows >= 2 * _SUBLANES:
        # Ensure >= 2 grid blocks so both v7x TensorCores get batch shards.
        half = _round_up(-(-rows // 2), _SUBLANES)
        tile_r = min(tile_r, half)
    tile_r = max(_SUBLANES, _round_up(tile_r, _SUBLANES))
    tile_r = min(tile_r, rows)
    grid = (pl.cdiv(rows, tile_r),)

    out_2d = pl.pallas_call(
        params_equation_kernel,
        out_shape=jax.ShapeDtypeStruct((rows, _LANES), features.dtype),
        grid_spec=pltpu.PrefetchScalarGridSpec(
            num_scalar_prefetch=0,
            grid=grid,
            in_specs=[
                # Tiny scalar parameter: keep it on the scalar path (SMEM).
                pl.BlockSpec(memory_space=pltpu.MemorySpace.SMEM),
                # Dense (8k, 128) feature slabs, tiled along the row axis.
                pl.BlockSpec((tile_r, _LANES), lambda i: (i, 0)),
                pl.BlockSpec((tile_r, _LANES), lambda i: (i, 0)),
            ],
            out_specs=pl.BlockSpec((tile_r, _LANES), lambda i: (i, 0)),
        ),
        compiler_params=pltpu.CompilerParams(
            dimension_semantics=("parallel",),
            vmem_limit_bytes=48 * 1024 * 1024,
        ),
        cost_estimate=pl.CostEstimate(
            flops=2 * N,
            transcendentals=0,
            bytes_accessed=12 * N,
        ),
    )(params, f0, f1)

    # Back to the module's (N, 1) output shape (relayout happens outside the
    # kernel; callers that can consume a flat (N,) vector should prefer that).
    return out_2d.reshape(n_pad)[:N].reshape(N, 1)


if __name__ == "__main__":
    key = jax.random.PRNGKey(0)
    k_feat, k_param = jax.random.split(key)

    # Small shapes consistent with the module's forward (needs F >= 2).
    N, F = 256, 4
    features = jax.random.normal(k_feat, (N, F), dtype=jnp.float32)
    # Module __init__ uses zeros((num_params, 1)); use a nonzero value here so
    # the multiply path is actually exercised.
    params = jax.random.normal(k_param, (NUM_PARAMS, 1), dtype=jnp.float32)

    out = params_equation_forward(features, params)
    jax.block_until_ready(out)

    # Reference (pure JAX, mirrors the PyTorch forward exactly).
    ref = jnp.matmul(features[:, 1:2], params) + features[:, 0:1]
    assert out.shape == (N, 1)
    assert jnp.allclose(out, ref, atol=1e-6), "mismatch vs reference"

    print("KERNEL_OK")
</pallas_src>

<mosaic_0001>
module attributes {stable_mosaic.version = 11 : i64} {
  func.func @params_equation_kernel(%arg0: i32, %arg1: memref<1x1xf32, #tpu.memory_space<smem>>, %arg2: memref<8x128xf32, #tpu.memory_space<vmem>>, %arg3: memref<8x128xf32, #tpu.memory_space<vmem>>, %arg4: memref<8x128xf32, #tpu.memory_space<vmem>>) attributes {dimension_semantics = [#tpu.dimension_semantics<parallel>], iteration_bounds = array<i64: 1>, scalar_prefetch = 0 : i64, scratch_operands = 0 : i64, tpu.core_type = #tpu.core_type<tc>, window_params = [{transform_indices = @transform_0, window_bounds = array<i64: 1, 1>}, {transform_indices = @transform_1, window_bounds = array<i64: 8, 128>}, {transform_indices = @transform_2, window_bounds = array<i64: 8, 128>}, {transform_indices = @transform_3, window_bounds = array<i64: 8, 128>}]} {
    %c0 = arith.constant 0 : index
    %c0_0 = arith.constant 0 : index
    %0 = memref.load %arg1[%c0, %c0_0] : memref<1x1xf32, #tpu.memory_space<smem>>
    %c0_1 = arith.constant 0 : index
    %c0_2 = arith.constant 0 : index
    %1 = vector.load %arg3[%c0_1, %c0_2] : memref<8x128xf32, #tpu.memory_space<vmem>>, vector<8x128xf32>
    %2 = vector.broadcast %0 : f32 to vector<8x128xf32>
    %3 = arith.mulf %1, %2 : vector<8x128xf32>
    %c0_3 = arith.constant 0 : index
    %c0_4 = arith.constant 0 : index
    %4 = vector.load %arg2[%c0_3, %c0_4] : memref<8x128xf32, #tpu.memory_space<vmem>>, vector<8x128xf32>
    %5 = arith.addf %3, %4 : vector<8x128xf32>
    %c0_5 = arith.constant 0 : index
    %c0_6 = arith.constant 0 : index
    %6 = vector.load %arg4[%c0_5, %c0_6] : memref<8x128xf32, #tpu.memory_space<vmem>>, vector<8x128xf32>
    tpu.vector_store %arg4[%c0_5, %c0_6], %5 {strides = array<i32>} : memref<8x128xf32, #tpu.memory_space<vmem>>, vector<8x128xf32>,
    return
  }
  func.func @transform_0(%arg0: i32) -> (i32, i32) {
    %c0_i32 = arith.constant 0 : i32
    %c0_i32_0 = arith.constant 0 : i32
    %c0_i32_1 = arith.constant 0 : i32
    return %c0_i32, %c0_i32_0 : i32, i32
  }
  func.func @transform_1(%arg0: i32) -> (i32, i32) {
    %c0_i32 = arith.constant 0 : i32
    %c0_i32_0 = arith.constant 0 : i32
    return %arg0, %c0_i32 : i32, i32
  }
  func.func @transform_2(%arg0: i32) -> (i32, i32) {
    %c0_i32 = arith.constant 0 : i32
    %c0_i32_0 = arith.constant 0 : i32
    return %arg0, %c0_i32 : i32, i32
  }
  func.func @transform_3(%arg0: i32) -> (i32, i32) {
    %c0_i32 = arith.constant 0 : i32
    %c0_i32_0 = arith.constant 0 : i32
    return %arg0, %c0_i32 : i32, i32
  }
}

</mosaic_0001>

<bundles_post_ra>
// kernel: tpu_custom_call.1
= control target key start
LH: loop header
LB: loop body
LE: loop exit
PB: predicated region body
PF: predicated region fallthrough
CT: control target
= control target key end

     0   :  { %9 = vsyncpa [#allocation4], 0  ;;  %s167_s0 = inlined_call_operand.<no memory space> [shape: f32[1,1], index: 0, kind: input, shape index: {}]   ;;  %s168_s1 = inlined_call_operand.hbm [shape: f32[8,128], index: 1, kind: input, shape index: {}]   ;;  %s169_s2 = inlined_call_operand.hbm [shape: f32[8,128], index: 2, kind: input, shape index: {}]   ;;  %s170_s3 = inlined_call_operand.hbm [shape: f32[8,128], index: 3, kind: output, shape index: {}]  }
   0x1   :  { %10 = vsyncpa [#allocation7], 0 }
   0x2   :  { %11 = vsyncpa [#allocation5], 0  ;;  %s132_s12 = smov [#allocation3]   ;;  %s133_s14 = smov [#allocation6]  }
   0x3   :  { %s20_s13 = sshll.u32 %s132_s12, 4  ;;  %s30_s15 = sshll.u32 %s133_s14, 4  ;;  %s21_s13 = int_to_ptr.vmem [resolvable:$true] %s20_s13  ;;  %s31_s15 = int_to_ptr.vmem [resolvable:$true] %s30_s15 }
   0x4   :  { %s74_s16 = scalar_lea.vmem %s21_s13, 128  ;;  %p79_p1 = scmp.lt.s32.totalorder %s21_s13, %s21_s13 }
   0x5   :  { %p75_p0 = scmp.ne.s32.totalorder %s21_s13, %s74_s16  ;;  %p80_p2 = scmp.lt.s32.totalorder %s74_s16, %s74_s16 }
   0x7   :  { %p81_p3 = por %p80_p2, %p79_p1 }
   0x9   :  { %p82_p4 = pnand %p81_p3, %p75_p0 }
   0xb   :  { %85 = shalt.err (!%p82_p4)
}
   0xc   :  { %23 = dma.hbm_to_vmem [thread:$0]  %s168_s1, 128, %s21_s13, [#allocation4]  }
   0xd   :  { %s94_s19 = scalar_lea.vmem %s31_s15, 128  ;;  %p99_p6 = scmp.lt.s32.totalorder %s31_s15, %s31_s15 }
   0xe   :  { %p95_p5 = scmp.ne.s32.totalorder %s31_s15, %s94_s19  ;;  %p100_p7 = scmp.lt.s32.totalorder %s94_s19, %s94_s19 }
  0x10   :  { %p101_p8 = por %p100_p7, %p99_p6 }
  0x12   :  { %p102_p9 = pnand %p101_p8, %p95_p5 }
  0x14   :  { %105 = shalt.err (!%p102_p9)
}
  0x15   :  { %33 = dma.hbm_to_vmem [thread:$0]  %s169_s2, 128, %s31_s15, [#allocation7]  }
  0x16   :  { %126 = dma.done.wait [#allocation4], 128  }
  0x17   :  { %127 = vsyncadd [#allocation4], 4294967168 }
  0x18   :  { %128 = dma.done.wait [#allocation7], 128  }
  0x19   :  { %129 = vsyncadd [#allocation7], 4294967168  ;;  %v42_v0 = vstv %s167_s0  ;;  %v41_v1 = vld [vmem:[#allocation6] sm:$0xff]  ;;  %v44_v2 = vld [vmem:[#allocation3] sm:$0xff]  ;;  %s134_s1 = smov [#allocation8]  }
  0x1a   :  { %s53_s24 = sshll.u32 %s134_s1, 4  ;;  %v43_v3 = vmul.f32 %v42_v0, %v41_v1  ;;  %s54_s24 = int_to_ptr.vmem [resolvable:$true] %s53_s24 }
  0x1b   :  { %s106_s25 = scalar_lea.vmem %s54_s24, 128  ;;  %p111_p11 = scmp.lt.s32.totalorder %s54_s24, %s54_s24 }
  0x1c   :  { %v45_v4 = vadd.f32 %v44_v2, %v43_v3  ;;  %p107_p10 = scmp.ne.s32.totalorder %s54_s24, %s106_s25  ;;  %p112_p12 = scmp.lt.s32.totalorder %s106_s25, %s106_s25 }
  0x1e   :  { %46 = vst [vmem:[#allocation8] sm:$0xff] %v45_v4  ;;  %p113_p13 = por %p112_p12, %p111_p11 }
  0x20   :  { %p114_p0 = pnand %p113_p13, %p107_p10 }
  0x22   :  { %117 = shalt.err (!%p114_p0)
}
  0x23   :  { %56 = dma.vmem_to_hbm [thread:$0]  %s54_s24, 128, %s170_s3, [#allocation5]  }
  0x24   :  { %130 = dma.done.wait [#allocation5], 128  }
  0x25   :  { %131 = vsyncadd [#allocation5], 4294967168 }
  0x26   :  { %60 = vsyncpa [#allocation4], 1 }
  0x27   :  { %61 = vsyncpa [#allocation7], 1 }
  0x28   :  { %62 = vsyncpa [#allocation5], 1 }

</bundles_post_ra>
